<compile_context>
chip_gen: v7x
topology: tpu7x:2x2x1
jax: 0.10.0
libtpu: 0.0.40
codegen_flags: <defaults>
</compile_context>

<pallas_src>
import functools

import jax
import jax.numpy as jnp
from jax.experimental import pallas as pl
from jax.experimental.pallas import tpu as pltpu


# ----------------------------------------------------------------------------
# Pallas kernel: full 2-layer LSTM recurrence + final linear + softmax
# ----------------------------------------------------------------------------
def deeplog_kernel(x_ref,      # (S*B, I)   flattened time-major input (row block t*B:(t+1)*B = step t)
                   wih0_ref,   # (I, 4H)    layer0 input->gates, gate cols [i|f|o|g]
                   b0_ref,     # (1, 4H)    layer0 bias (b_ih + b_hh), reordered
                   w01_ref,    # (H, 8H)    [whh0 | wih1] fused recurrent weights
                   whh1_ref,   # (H, 4H)    layer1 hidden->gates
                   b1_ref,     # (1, 4H)    layer1 bias (b_ih + b_hh), reordered
                   wout_ref,   # (H, Opad)  output linear weight (columns zero-padded)
                   bout_ref,   # (1, Opad)  output linear bias (padding = -1e30)
                   out_ref,    # (B, Opad)  softmax probabilities (padded lanes == 0)
                   *, eff_seq, eff_batch):
    H = whh1_ref.shape[0]
    G = 4 * H
    S = eff_seq
    B = eff_batch

    # ---- hoisted layer-0 input projection: one big matmul, bias folded once ----
    x_gates = (jnp.dot(x_ref[...], wih0_ref[...], preferred_element_type=jnp.float32)
               + b0_ref[...])                                   # (S*B, 4H)

    w01 = w01_ref[...]                                          # (H, 8H)
    whh1 = whh1_ref[...]                                        # (H, 4H)
    b1 = jnp.broadcast_to(b1_ref[...], (B, G))                  # hoisted broadcast

    def activate(gates, c_prev):
        # gate columns are [i | f | o | g]: one sigmoid over 3H, one tanh over H
        s = jax.nn.sigmoid(gates[:, :3 * H])
        g = jnp.tanh(gates[:, 3 * H:])
        i_g = s[:, :H]
        f_g = s[:, H:2 * H]
        o_g = s[:, 2 * H:3 * H]
        c_new = f_g * c_prev + i_g * g
        h_new = o_g * jnp.tanh(c_new)
        return h_new, c_new

    zeros = jnp.zeros((B, H), dtype=jnp.float32)

    # ---- staggered, fully unrolled recurrence --------------------------------
    # prologue (t = 0): h0(-1) == 0, so layer0's recurrent matmul vanishes
    h0, c0 = activate(x_gates[0:B], zeros)
    h1, c1 = zeros, zeros

    # main loop: at iteration t compute layer0(t) and layer1(t-1); both only
    # need carry state, so the two MXU pushes issue back-to-back.
    for t in range(1, S):
        rec01 = jnp.dot(h0, w01, preferred_element_type=jnp.float32)      # (B, 8H)
        gates1 = rec01[:, G:] + b1                                        # h0(t-1) @ wih1 + b1
        if t > 1:   # at t == 1 the carry h1 is zero, skip the zero matmul
            gates1 = gates1 + jnp.dot(h1, whh1, preferred_element_type=jnp.float32)
        gates0 = x_gates[t * B:(t + 1) * B] + rec01[:, :G]                # + h0(t-1) @ whh0
        h1, c1 = activate(gates1, c1)                                     # layer1 step t-1
        h0, c0 = activate(gates0, c0)                                     # layer0 step t

    # epilogue: final layer-1 step (S-1)
    rec01 = jnp.dot(h0, w01, preferred_element_type=jnp.float32)
    gates1 = (rec01[:, G:] + b1
              + jnp.dot(h1, whh1, preferred_element_type=jnp.float32))
    h1, _ = activate(gates1, c1)

    # ---- Linear + softmax (lane-dense, padded lanes carry -1e30 logits) ------
    logits = (jnp.dot(h1, wout_ref[...], preferred_element_type=jnp.float32)
              + bout_ref[...])
    m = jnp.max(logits, axis=-1, keepdims=True)
    e = jnp.exp(logits - m)
    denom = jnp.sum(e, axis=-1, keepdims=True)
    out_ref[...] = e * pl.reciprocal(denom, approx=False)


# ----------------------------------------------------------------------------
# Wrapper: parameter plumbing + pallas_call
# ----------------------------------------------------------------------------
def _reorder_gates(p, H):
    """PyTorch LSTM stacks gates as [i|f|g|o] along dim 0; reorder to [i|f|o|g]."""
    i, f, g, o = jnp.split(p, 4, axis=0)
    return jnp.concatenate([i, f, o, g], axis=0)


@functools.partial(jax.jit, static_argnames=("output_size",))
def deeplog_forward(X, params, output_size):
    # X.permute(1,0,2) followed by the kernel's time-major re-transpose is the
    # identity: the recurrence axis (eff_seq) is X's dim 0 (= original batch B)
    # and the LSTM "batch" (eff_batch) is X's dim 1 (= original T).
    eff_seq, eff_batch, input_size = X.shape
    H = params["weight_hh_l0"].shape[1]
    O = output_size
    O_pad = ((O + 127) // 128) * 128

    # Pre-transpose weights, permute gate columns, fuse the two bias vectors.
    wih0 = _reorder_gates(params["weight_ih_l0"], H).T                       # (I, 4H)
    whh0 = _reorder_gates(params["weight_hh_l0"], H).T                       # (H, 4H)
    b0 = _reorder_gates(params["bias_ih_l0"] + params["bias_hh_l0"], H)[None, :]
    wih1 = _reorder_gates(params["weight_ih_l1"], H).T                       # (H, 4H)
    whh1 = _reorder_gates(params["weight_hh_l1"], H).T                       # (H, 4H)
    b1 = _reorder_gates(params["bias_ih_l1"] + params["bias_hh_l1"], H)[None, :]
    # Staggered-layer fusion: both recurrent matmuls that consume h0(t-1)
    # share one 256-wide MXU pass.
    w01 = jnp.concatenate([whh0, wih1], axis=1)                              # (H, 8H)

    # Lane-dense output: pad columns to a multiple of 128. Padded weight
    # columns are 0 and padded biases -1e30, so their softmax terms are 0.
    wout = params["out_weight"].T                                            # (H, O)
    bout = params["out_bias"][None, :]                                       # (1, O)
    wout_p = jnp.pad(wout, ((0, 0), (0, O_pad - O)))
    bout_p = jnp.pad(bout, ((0, 0), (0, O_pad - O)), constant_values=-1e30)

    # Flatten (eff_seq, eff_batch, I) -> (eff_seq*eff_batch, I): free reshape
    # in the wrapper, lets the kernel do the layer-0 projection as one matmul.
    x2d = X.astype(jnp.float32).reshape(eff_seq * eff_batch, input_size)

    vmem = pl.BlockSpec(memory_space=pltpu.MemorySpace.VMEM)
    kernel = functools.partial(deeplog_kernel, eff_seq=eff_seq, eff_batch=eff_batch)
    out_padded = pl.pallas_call(
        kernel,
        out_shape=jax.ShapeDtypeStruct((eff_batch, O_pad), jnp.float32),
        in_specs=[vmem] * 8,
        out_specs=vmem,
    )(x2d, wih0, b0, w01, whh1, b1, wout_p, bout_p)
    return out_padded[:, :O]


# ----------------------------------------------------------------------------
# Pure-JAX reference (mirrors PyTorch nn.LSTM / nn.Linear / nn.Softmax exactly)
# ----------------------------------------------------------------------------
def deeplog_reference(X, params, hidden_size, output_size):
    Xp = jnp.transpose(X, (1, 0, 2))           # (eff_batch, eff_seq, I)
    eff_batch, eff_seq, _ = Xp.shape
    H = hidden_size

    def cell(x_t, h, c, w_ih, w_hh, b_ih, b_hh):
        g = x_t @ w_ih.T + b_ih + h @ w_hh.T + b_hh
        i = jax.nn.sigmoid(g[:, 0 * H:1 * H])
        f = jax.nn.sigmoid(g[:, 1 * H:2 * H])
        gg = jnp.tanh(g[:, 2 * H:3 * H])
        o = jax.nn.sigmoid(g[:, 3 * H:4 * H])
        c = f * c + i * gg
        h = o * jnp.tanh(c)
        return h, c

    h0 = c0 = h1 = c1 = jnp.zeros((eff_batch, H), jnp.float32)
    for t in range(eff_seq):
        x_t = Xp[:, t, :]
        h0, c0 = cell(x_t, h0, c0, params["weight_ih_l0"], params["weight_hh_l0"],
                      params["bias_ih_l0"], params["bias_hh_l0"])
        h1, c1 = cell(h0, h1, c1, params["weight_ih_l1"], params["weight_hh_l1"],
                      params["bias_ih_l1"], params["bias_hh_l1"])
    logits = h1 @ params["out_weight"].T + params["out_bias"]
    return jax.nn.softmax(logits, axis=1)


# ----------------------------------------------------------------------------
# Deterministic parameter init (shapes follow nn.LSTM / nn.Linear)
# ----------------------------------------------------------------------------
def init_params(key, input_size, hidden_size, output_size):
    H, I, O = hidden_size, input_size, output_size
    bound = 1.0 / jnp.sqrt(jnp.float32(H))
    names_shapes = [
        ("weight_ih_l0", (4 * H, I)), ("weight_hh_l0", (4 * H, H)),
        ("bias_ih_l0", (4 * H,)), ("bias_hh_l0", (4 * H,)),
        ("weight_ih_l1", (4 * H, H)), ("weight_hh_l1", (4 * H, H)),
        ("bias_ih_l1", (4 * H,)), ("bias_hh_l1", (4 * H,)),
        ("out_weight", (O, H)), ("out_bias", (O,)),
    ]
    params = {}
    keys = jax.random.split(key, len(names_shapes))
    for k, (name, shape) in zip(keys, names_shapes):
        params[name] = jax.random.uniform(k, shape, jnp.float32, -bound, bound)
    return params


if __name__ == "__main__":
    # Small, module-consistent shapes.
    input_size, hidden_size, output_size, num_layers = 16, 32, 16, 2
    B, T = 4, 8   # X is (B, T, input_size); result will be (T, output_size)

    key = jax.random.PRNGKey(0)
    k_x, k_p = jax.random.split(key)
    X = jax.random.normal(k_x, (B, T, input_size), dtype=jnp.float32)
    params = init_params(k_p, input_size, hidden_size, output_size)

    out = deeplog_forward(X, params, output_size)
    out = jax.block_until_ready(out)

    ref = deeplog_reference(X, params, hidden_size, output_size)
    assert out.shape == (T, output_size), out.shape
    assert jnp.allclose(out, ref, atol=2e-3, rtol=2e-3), float(jnp.max(jnp.abs(out - ref)))
    # rows of a softmax must sum to 1
    assert jnp.allclose(jnp.sum(out, axis=1), 1.0, atol=1e-4)

    print("KERNEL_OK")
</pallas_src>

<mosaic_0001>
module attributes {stable_mosaic.version = 11 : i64} {
  func.func @deeplog_kernel(%arg0: memref<32x16xf32, #tpu.memory_space<vmem>>, %arg1: memref<16x128xf32, #tpu.memory_space<vmem>>, %arg2: memref<1x128xf32, #tpu.memory_space<vmem>>, %arg3: memref<32x256xf32, #tpu.memory_space<vmem>>, %arg4: memref<32x128xf32, #tpu.memory_space<vmem>>, %arg5: memref<1x128xf32, #tpu.memory_space<vmem>>, %arg6: memref<32x128xf32, #tpu.memory_space<vmem>>, %arg7: memref<1x128xf32, #tpu.memory_space<vmem>>, %arg8: memref<8x128xf32, #tpu.memory_space<vmem>>) attributes {dimension_semantics = [], scalar_prefetch = 0 : i64, scratch_operands = 0 : i64, tpu.core_type = #tpu.core_type<tc>} {
    %c0 = arith.constant 0 : index
    %c0_0 = arith.constant 0 : index
    %0 = vector.load %arg0[%c0, %c0_0] : memref<32x16xf32, #tpu.memory_space<vmem>>, vector<32x16xf32>
    %c0_1 = arith.constant 0 : index
    %c0_2 = arith.constant 0 : index
    %1 = vector.load %arg1[%c0_1, %c0_2] : memref<16x128xf32, #tpu.memory_space<vmem>>, vector<16x128xf32>
    %cst = arith.constant dense<0.000000e+00> : vector<32x128xf32>
    %2 = tpu.matmul %0, %1, %cst {dimension_numbers = #tpu.dot_dimension_numbers<[1], [0], [0], [1], [0, 0, 1, 1], [], []>} : vector<32x16xf32>, vector<16x128xf32>, vector<32x128xf32> -> vector<32x128xf32>
    %c0_3 = arith.constant 0 : index
    %c0_4 = arith.constant 0 : index
    %3 = vector.load %arg2[%c0_3, %c0_4] : memref<1x128xf32, #tpu.memory_space<vmem>>, vector<1x128xf32>
    %4 = vector.broadcast %3 : vector<1x128xf32> to vector<32x128xf32>
    %5 = arith.addf %2, %4 : vector<32x128xf32>
    %c0_5 = arith.constant 0 : index
    %c0_6 = arith.constant 0 : index
    %6 = vector.load %arg3[%c0_5, %c0_6] : memref<32x256xf32, #tpu.memory_space<vmem>>, vector<32x256xf32>
    %c0_7 = arith.constant 0 : index
    %c0_8 = arith.constant 0 : index
    %7 = vector.load %arg4[%c0_7, %c0_8] : memref<32x128xf32, #tpu.memory_space<vmem>>, vector<32x128xf32>
    %c0_9 = arith.constant 0 : index
    %c0_10 = arith.constant 0 : index
    %8 = vector.load %arg5[%c0_9, %c0_10] : memref<1x128xf32, #tpu.memory_space<vmem>>, vector<1x128xf32>
    %9 = vector.shape_cast %8 : vector<1x128xf32> to vector<1x128xf32>
    %10 = vector.broadcast %9 : vector<1x128xf32> to vector<8x128xf32>
    %cst_11 = arith.constant 0.000000e+00 : f32
    %11 = vector.broadcast %cst_11 : f32 to vector<8x32xf32>
    %12 = vector.extract_strided_slice %5 {offsets = [0, 0], sizes = [8, 128], strides = [1, 1]} : vector<32x128xf32> to vector<8x128xf32>
    %13 = vector.extract_strided_slice %12 {offsets = [0, 0], sizes = [8, 96], strides = [1, 1]} : vector<8x128xf32> to vector<8x96xf32>
    %14 = arith.negf %13 : vector<8x96xf32>
    %15 = math.exp %14 : vector<8x96xf32>
    %cst_12 = arith.constant 1.000000e+00 : f32
    %16 = vector.broadcast %cst_12 : f32 to vector<8x96xf32>
    %17 = arith.addf %16, %15 : vector<8x96xf32>
    %18 = arith.divf %16, %17 : vector<8x96xf32>
    %19 = vector.extract_strided_slice %12 {offsets = [0, 96], sizes = [8, 32], strides = [1, 1]} : vector<8x128xf32> to vector<8x32xf32>
    %20 = math.tanh %19 : vector<8x32xf32>
    %21 = vector.extract_strided_slice %18 {offsets = [0, 0], sizes = [8, 32], strides = [1, 1]} : vector<8x96xf32> to vector<8x32xf32>
    %22 = vector.extract_strided_slice %18 {offsets = [0, 32], sizes = [8, 32], strides = [1, 1]} : vector<8x96xf32> to vector<8x32xf32>
    %23 = vector.extract_strided_slice %18 {offsets = [0, 64], sizes = [8, 32], strides = [1, 1]} : vector<8x96xf32> to vector<8x32xf32>
    %24 = arith.mulf %22, %11 : vector<8x32xf32>
    %25 = arith.mulf %21, %20 : vector<8x32xf32>
    %26 = arith.addf %24, %25 : vector<8x32xf32>
    %27 = math.tanh %26 : vector<8x32xf32>
    %28 = arith.mulf %23, %27 : vector<8x32xf32>
    %cst_13 = arith.constant dense<0.000000e+00> : vector<8x256xf32>
    %29 = tpu.matmul %28, %6, %cst_13 {dimension_numbers = #tpu.dot_dimension_numbers<[1], [0], [0], [1], [0, 0, 1, 1], [], []>} : vector<8x32xf32>, vector<32x256xf32>, vector<8x256xf32> -> vector<8x256xf32>
    %30 = vector.extract_strided_slice %29 {offsets = [0, 128], sizes = [8, 128], strides = [1, 1]} : vector<8x256xf32> to vector<8x128xf32>
    %31 = arith.addf %30, %10 : vector<8x128xf32>
    %32 = vector.extract_strided_slice %5 {offsets = [8, 0], sizes = [8, 128], strides = [1, 1]} : vector<32x128xf32> to vector<8x128xf32>
    %33 = vector.extract_strided_slice %29 {offsets = [0, 0], sizes = [8, 128], strides = [1, 1]} : vector<8x256xf32> to vector<8x128xf32>
    %34 = arith.addf %32, %33 : vector<8x128xf32>
    %35 = vector.extract_strided_slice %31 {offsets = [0, 0], sizes = [8, 96], strides = [1, 1]} : vector<8x128xf32> to vector<8x96xf32>
    %36 = arith.negf %35 : vector<8x96xf32>
    %37 = math.exp %36 : vector<8x96xf32>
    %cst_14 = arith.constant 1.000000e+00 : f32
    %38 = vector.broadcast %cst_14 : f32 to vector<8x96xf32>
    %39 = arith.addf %38, %37 : vector<8x96xf32>
    %40 = arith.divf %38, %39 : vector<8x96xf32>
    %41 = vector.extract_strided_slice %31 {offsets = [0, 96], sizes = [8, 32], strides = [1, 1]} : vector<8x128xf32> to vector<8x32xf32>
    %42 = math.tanh %41 : vector<8x32xf32>
    %43 = vector.extract_strided_slice %40 {offsets = [0, 0], sizes = [8, 32], strides = [1, 1]} : vector<8x96xf32> to vector<8x32xf32>
    %44 = vector.extract_strided_slice %40 {offsets = [0, 32], sizes = [8, 32], strides = [1, 1]} : vector<8x96xf32> to vector<8x32xf32>
    %45 = vector.extract_strided_slice %40 {offsets = [0, 64], sizes = [8, 32], strides = [1, 1]} : vector<8x96xf32> to vector<8x32xf32>
    %46 = arith.mulf %44, %11 : vector<8x32xf32>
    %47 = arith.mulf %43, %42 : vector<8x32xf32>
    %48 = arith.addf %46, %47 : vector<8x32xf32>
    %49 = math.tanh %48 : vector<8x32xf32>
    %50 = arith.mulf %45, %49 : vector<8x32xf32>
    %51 = vector.extract_strided_slice %34 {offsets = [0, 0], sizes = [8, 96], strides = [1, 1]} : vector<8x128xf32> to vector<8x96xf32>
    %52 = arith.negf %51 : vector<8x96xf32>
    %53 = math.exp %52 : vector<8x96xf32>
    %cst_15 = arith.constant 1.000000e+00 : f32
    %54 = vector.broadcast %cst_15 : f32 to vector<8x96xf32>
    %55 = arith.addf %54, %53 : vector<8x96xf32>
    %56 = arith.divf %54, %55 : vector<8x96xf32>
    %57 = vector.extract_strided_slice %34 {offsets = [0, 96], sizes = [8, 32], strides = [1, 1]} : vector<8x128xf32> to vector<8x32xf32>
    %58 = math.tanh %57 : vector<8x32xf32>
    %59 = vector.extract_strided_slice %56 {offsets = [0, 0], sizes = [8, 32], strides = [1, 1]} : vector<8x96xf32> to vector<8x32xf32>
    %60 = vector.extract_strided_slice %56 {offsets = [0, 32], sizes = [8, 32], strides = [1, 1]} : vector<8x96xf32> to vector<8x32xf32>
    %61 = vector.extract_strided_slice %56 {offsets = [0, 64], sizes = [8, 32], strides = [1, 1]} : vector<8x96xf32> to vector<8x32xf32>
    %62 = arith.mulf %60, %26 : vector<8x32xf32>
    %63 = arith.mulf %59, %58 : vector<8x32xf32>
    %64 = arith.addf %62, %63 : vector<8x32xf32>
    %65 = math.tanh %64 : vector<8x32xf32>
    %66 = arith.mulf %61, %65 : vector<8x32xf32>
    %cst_16 = arith.constant dense<0.000000e+00> : vector<8x256xf32>
    %67 = tpu.matmul %66, %6, %cst_16 {dimension_numbers = #tpu.dot_dimension_numbers<[1], [0], [0], [1], [0, 0, 1, 1], [], []>} : vector<8x32xf32>, vector<32x256xf32>, vector<8x256xf32> -> vector<8x256xf32>
    %68 = vector.extract_strided_slice %67 {offsets = [0, 128], sizes = [8, 128], strides = [1, 1]} : vector<8x256xf32> to vector<8x128xf32>
    %69 = arith.addf %68, %10 : vector<8x128xf32>
    %cst_17 = arith.constant dense<0.000000e+00> : vector<8x128xf32>
    %70 = tpu.matmul %50, %7, %cst_17 {dimension_numbers = #tpu.dot_dimension_numbers<[1], [0], [0], [1], [0, 0, 1, 1], [], []>} : vector<8x32xf32>, vector<32x128xf32>, vector<8x128xf32> -> vector<8x128xf32>
    %71 = arith.addf %69, %70 : vector<8x128xf32>
    %72 = vector.extract_strided_slice %5 {offsets = [16, 0], sizes = [8, 128], strides = [1, 1]} : vector<32x128xf32> to vector<8x128xf32>
    %73 = vector.extract_strided_slice %67 {offsets = [0, 0], sizes = [8, 128], strides = [1, 1]} : vector<8x256xf32> to vector<8x128xf32>
    %74 = arith.addf %72, %73 : vector<8x128xf32>
    %75 = vector.extract_strided_slice %71 {offsets = [0, 0], sizes = [8, 96], strides = [1, 1]} : vector<8x128xf32> to vector<8x96xf32>
    %76 = arith.negf %75 : vector<8x96xf32>
    %77 = math.exp %76 : vector<8x96xf32>
    %cst_18 = arith.constant 1.000000e+00 : f32
    %78 = vector.broadcast %cst_18 : f32 to vector<8x96xf32>
    %79 = arith.addf %78, %77 : vector<8x96xf32>
    %80 = arith.divf %78, %79 : vector<8x96xf32>
    %81 = vector.extract_strided_slice %71 {offsets = [0, 96], sizes = [8, 32], strides = [1, 1]} : vector<8x128xf32> to vector<8x32xf32>
    %82 = math.tanh %81 : vector<8x32xf32>
    %83 = vector.extract_strided_slice %80 {offsets = [0, 0], sizes = [8, 32], strides = [1, 1]} : vector<8x96xf32> to vector<8x32xf32>
    %84 = vector.extract_strided_slice %80 {offsets = [0, 32], sizes = [8, 32], strides = [1, 1]} : vector<8x96xf32> to vector<8x32xf32>
    %85 = vector.extract_strided_slice %80 {offsets = [0, 64], sizes = [8, 32], strides = [1, 1]} : vector<8x96xf32> to vector<8x32xf32>
    %86 = arith.mulf %84, %48 : vector<8x32xf32>
    %87 = arith.mulf %83, %82 : vector<8x32xf32>
    %88 = arith.addf %86, %87 : vector<8x32xf32>
    %89 = math.tanh %88 : vector<8x32xf32>
    %90 = arith.mulf %85, %89 : vector<8x32xf32>
    %91 = vector.extract_strided_slice %74 {offsets = [0, 0], sizes = [8, 96], strides = [1, 1]} : vector<8x128xf32> to vector<8x96xf32>
    %92 = arith.negf %91 : vector<8x96xf32>
    %93 = math.exp %92 : vector<8x96xf32>
    %cst_19 = arith.constant 1.000000e+00 : f32
    %94 = vector.broadcast %cst_19 : f32 to vector<8x96xf32>
    %95 = arith.addf %94, %93 : vector<8x96xf32>
    %96 = arith.divf %94, %95 : vector<8x96xf32>
    %97 = vector.extract_strided_slice %74 {offsets = [0, 96], sizes = [8, 32], strides = [1, 1]} : vector<8x128xf32> to vector<8x32xf32>
    %98 = math.tanh %97 : vector<8x32xf32>
    %99 = vector.extract_strided_slice %96 {offsets = [0, 0], sizes = [8, 32], strides = [1, 1]} : vector<8x96xf32> to vector<8x32xf32>
    %100 = vector.extract_strided_slice %96 {offsets = [0, 32], sizes = [8, 32], strides = [1, 1]} : vector<8x96xf32> to vector<8x32xf32>
    %101 = vector.extract_strided_slice %96 {offsets = [0, 64], sizes = [8, 32], strides = [1, 1]} : vector<8x96xf32> to vector<8x32xf32>
    %102 = arith.mulf %100, %64 : vector<8x32xf32>
    %103 = arith.mulf %99, %98 : vector<8x32xf32>
    %104 = arith.addf %102, %103 : vector<8x32xf32>
    %105 = math.tanh %104 : vector<8x32xf32>
    %106 = arith.mulf %101, %105 : vector<8x32xf32>
    %cst_20 = arith.constant dense<0.000000e+00> : vector<8x256xf32>
    %107 = tpu.matmul %106, %6, %cst_20 {dimension_numbers = #tpu.dot_dimension_numbers<[1], [0], [0], [1], [0, 0, 1, 1], [], []>} : vector<8x32xf32>, vector<32x256xf32>, vector<8x256xf32> -> vector<8x256xf32>
    %108 = vector.extract_strided_slice %107 {offsets = [0, 128], sizes = [8, 128], strides = [1, 1]} : vector<8x256xf32> to vector<8x128xf32>
    %109 = arith.addf %108, %10 : vector<8x128xf32>
    %cst_21 = arith.constant dense<0.000000e+00> : vector<8x128xf32>
    %110 = tpu.matmul %90, %7, %cst_21 {dimension_numbers = #tpu.dot_dimension_numbers<[1], [0], [0], [1], [0, 0, 1, 1], [], []>} : vector<8x32xf32>, vector<32x128xf32>, vector<8x128xf32> -> vector<8x128xf32>
    %111 = arith.addf %109, %110 : vector<8x128xf32>
    %112 = vector.extract_strided_slice %5 {offsets = [24, 0], sizes = [8, 128], strides = [1, 1]} : vector<32x128xf32> to vector<8x128xf32>
    %113 = vector.extract_strided_slice %107 {offsets = [0, 0], sizes = [8, 128], strides = [1, 1]} : vector<8x256xf32> to vector<8x128xf32>
    %114 = arith.addf %112, %113 : vector<8x128xf32>
    %115 = vector.extract_strided_slice %111 {offsets = [0, 0], sizes = [8, 96], strides = [1, 1]} : vector<8x128xf32> to vector<8x96xf32>
    %116 = arith.negf %115 : vector<8x96xf32>
    %117 = math.exp %116 : vector<8x96xf32>
    %cst_22 = arith.constant 1.000000e+00 : f32
    %118 = vector.broadcast %cst_22 : f32 to vector<8x96xf32>
    %119 = arith.addf %118, %117 : vector<8x96xf32>
    %120 = arith.divf %118, %119 : vector<8x96xf32>
    %121 = vector.extract_strided_slice %111 {offsets = [0, 96], sizes = [8, 32], strides = [1, 1]} : vector<8x128xf32> to vector<8x32xf32>
    %122 = math.tanh %121 : vector<8x32xf32>
    %123 = vector.extract_strided_slice %120 {offsets = [0, 0], sizes = [8, 32], strides = [1, 1]} : vector<8x96xf32> to vector<8x32xf32>
    %124 = vector.extract_strided_slice %120 {offsets = [0, 32], sizes = [8, 32], strides = [1, 1]} : vector<8x96xf32> to vector<8x32xf32>
    %125 = vector.extract_strided_slice %120 {offsets = [0, 64], sizes = [8, 32], strides = [1, 1]} : vector<8x96xf32> to vector<8x32xf32>
    %126 = arith.mulf %124, %88 : vector<8x32xf32>
    %127 = arith.mulf %123, %122 : vector<8x32xf32>
    %128 = arith.addf %126, %127 : vector<8x32xf32>
    %129 = math.tanh %128 : vector<8x32xf32>
    %130 = arith.mulf %125, %129 : vector<8x32xf32>
    %131 = vector.extract_strided_slice %114 {offsets = [0, 0], sizes = [8, 96], strides = [1, 1]} : vector<8x128xf32> to vector<8x96xf32>
    %132 = arith.negf %131 : vector<8x96xf32>
    %133 = math.exp %132 : vector<8x96xf32>
    %cst_23 = arith.constant 1.000000e+00 : f32
    %134 = vector.broadcast %cst_23 : f32 to vector<8x96xf32>
    %135 = arith.addf %134, %133 : vector<8x96xf32>
    %136 = arith.divf %134, %135 : vector<8x96xf32>
    %137 = vector.extract_strided_slice %114 {offsets = [0, 96], sizes = [8, 32], strides = [1, 1]} : vector<8x128xf32> to vector<8x32xf32>
    %138 = math.tanh %137 : vector<8x32xf32>
    %139 = vector.extract_strided_slice %136 {offsets = [0, 0], sizes = [8, 32], strides = [1, 1]} : vector<8x96xf32> to vector<8x32xf32>
    %140 = vector.extract_strided_slice %136 {offsets = [0, 32], sizes = [8, 32], strides = [1, 1]} : vector<8x96xf32> to vector<8x32xf32>
    %141 = vector.extract_strided_slice %136 {offsets = [0, 64], sizes = [8, 32], strides = [1, 1]} : vector<8x96xf32> to vector<8x32xf32>
    %142 = arith.mulf %140, %104 : vector<8x32xf32>
    %143 = arith.mulf %139, %138 : vector<8x32xf32>
    %144 = arith.addf %142, %143 : vector<8x32xf32>
    %145 = math.tanh %144 : vector<8x32xf32>
    %146 = arith.mulf %141, %145 : vector<8x32xf32>
    %cst_24 = arith.constant dense<0.000000e+00> : vector<8x256xf32>
    %147 = tpu.matmul %146, %6, %cst_24 {dimension_numbers = #tpu.dot_dimension_numbers<[1], [0], [0], [1], [0, 0, 1, 1], [], []>} : vector<8x32xf32>, vector<32x256xf32>, vector<8x256xf32> -> vector<8x256xf32>
    %148 = vector.extract_strided_slice %147 {offsets = [0, 128], sizes = [8, 128], strides = [1, 1]} : vector<8x256xf32> to vector<8x128xf32>
    %149 = arith.addf %148, %10 : vector<8x128xf32>
    %cst_25 = arith.constant dense<0.000000e+00> : vector<8x128xf32>
    %150 = tpu.matmul %130, %7, %cst_25 {dimension_numbers = #tpu.dot_dimension_numbers<[1], [0], [0], [1], [0, 0, 1, 1], [], []>} : vector<8x32xf32>, vector<32x128xf32>, vector<8x128xf32> -> vector<8x128xf32>
    %151 = arith.addf %149, %150 : vector<8x128xf32>
    %152 = vector.extract_strided_slice %151 {offsets = [0, 0], sizes = [8, 96], strides = [1, 1]} : vector<8x128xf32> to vector<8x96xf32>
    %153 = arith.negf %152 : vector<8x96xf32>
    %154 = math.exp %153 : vector<8x96xf32>
    %cst_26 = arith.constant 1.000000e+00 : f32
    %155 = vector.broadcast %cst_26 : f32 to vector<8x96xf32>
    %156 = arith.addf %155, %154 : vector<8x96xf32>
    %157 = arith.divf %155, %156 : vector<8x96xf32>
    %158 = vector.extract_strided_slice %151 {offsets = [0, 96], sizes = [8, 32], strides = [1, 1]} : vector<8x128xf32> to vector<8x32xf32>
    %159 = math.tanh %158 : vector<8x32xf32>
    %160 = vector.extract_strided_slice %157 {offsets = [0, 0], sizes = [8, 32], strides = [1, 1]} : vector<8x96xf32> to vector<8x32xf32>
    %161 = vector.extract_strided_slice %157 {offsets = [0, 32], sizes = [8, 32], strides = [1, 1]} : vector<8x96xf32> to vector<8x32xf32>
    %162 = vector.extract_strided_slice %157 {offsets = [0, 64], sizes = [8, 32], strides = [1, 1]} : vector<8x96xf32> to vector<8x32xf32>
    %163 = arith.mulf %161, %128 : vector<8x32xf32>
    %164 = arith.mulf %160, %159 : vector<8x32xf32>
    %165 = arith.addf %163, %164 : vector<8x32xf32>
    %166 = math.tanh %165 : vector<8x32xf32>
    %167 = arith.mulf %162, %166 : vector<8x32xf32>
    %c0_27 = arith.constant 0 : index
    %c0_28 = arith.constant 0 : index
    %168 = vector.load %arg6[%c0_27, %c0_28] : memref<32x128xf32, #tpu.memory_space<vmem>>, vector<32x128xf32>
    %cst_29 = arith.constant dense<0.000000e+00> : vector<8x128xf32>
    %169 = tpu.matmul %167, %168, %cst_29 {dimension_numbers = #tpu.dot_dimension_numbers<[1], [0], [0], [1], [0, 0, 1, 1], [], []>} : vector<8x32xf32>, vector<32x128xf32>, vector<8x128xf32> -> vector<8x128xf32>
    %c0_30 = arith.constant 0 : index
    %c0_31 = arith.constant 0 : index
    %170 = vector.load %arg7[%c0_30, %c0_31] : memref<1x128xf32, #tpu.memory_space<vmem>>, vector<1x128xf32>
    %171 = vector.broadcast %170 : vector<1x128xf32> to vector<8x128xf32>
    %172 = arith.addf %169, %171 : vector<8x128xf32>
    %cst_32 = arith.constant dense<0xFF800000> : vector<8xf32>
    %173 = vector.multi_reduction <maximumf>, %172, %cst_32 [1] : vector<8x128xf32> to vector<8xf32>
    %174 = vector.shape_cast %173 : vector<8xf32> to vector<8x1xf32>
    %175 = vector.broadcast %174 : vector<8x1xf32> to vector<8x128xf32>
    %176 = arith.subf %172, %175 : vector<8x128xf32>
    %177 = math.exp %176 : vector<8x128xf32>
    %cst_33 = arith.constant dense<0.000000e+00> : vector<8xf32>
    %178 = vector.multi_reduction <add>, %177, %cst_33 [1] : vector<8x128xf32> to vector<8xf32>
    %179 = vector.shape_cast %178 : vector<8xf32> to vector<8x1xf32>
    %180 = tpu.reciprocal %179 : vector<8x1xf32> -> vector<8x1xf32>
    %181 = vector.broadcast %180 : vector<8x1xf32> to vector<8x128xf32>
    %182 = arith.mulf %177, %181 : vector<8x128xf32>
    %c0_34 = arith.constant 0 : index
    %c0_35 = arith.constant 0 : index
    %183 = vector.load %arg8[%c0_34, %c0_35] : memref<8x128xf32, #tpu.memory_space<vmem>>, vector<8x128xf32>
    tpu.vector_store %arg8[%c0_34, %c0_35], %182 {strides = array<i32>} : memref<8x128xf32, #tpu.memory_space<vmem>>, vector<8x128xf32>,
    return
  }
}

</mosaic_0001>

<bundles_post_ra>
// kernel: deeplog_forward.1
= control target key start
LH: loop header
LB: loop body
LE: loop exit
PB: predicated region body
PF: predicated region fallthrough
CT: control target
= control target key end

     0   :  { %vm43_vm0 = vcmask 130048   ;;  %s1525_s0 = inlined_call_operand.vmem [shape: f32[32,16], index: 0, kind: input, shape index: {}]   ;;  %s1526_s1 = inlined_call_operand.vmem [shape: f32[16,128], index: 1, kind: input, shape index: {}]   ;;  %s1527_s2 = inlined_call_operand.vmem [shape: f32[1,128], index: 2, kind: input, shape index: {}]   ;;  %s1528_s3 = inlined_call_operand.vmem [shape: f32[32,256], index: 3, kind: input, shape index: {}]   ;;  %s1529_s4 = inlined_call_operand.vmem [shape: f32[32,128], index: 4, kind: input, shape index: {}]   ;;  %s1530_s5 = inlined_call_operand.vmem [shape: f32[1,128], index: 5, kind: input, shape index: {}]   ;;  %s1531_s6 = inlined_call_operand.vmem [shape: f32[32,128], index: 6, kind: input, shape index: {}]   ;;  %s1532_s7 = inlined_call_operand.vmem [shape: f32[1,128], index: 7, kind: input, shape index: {}]   ;;  %s1533_s8 = inlined_call_operand.hbm [shape: f32[8,128], index: 8, kind: output, shape index: {}]  }
   0x1   :  { %v34_v0 = vld [vmem:[%s1526_s1] sm:$0xff]  ;;  %v35_v1 = vld [vmem:[%s1526_s1 + $0x8] sm:$0xff] }
   0x2   :  { %v30_v2 = vld [vmem:[%s1525_s0] sm:$0xff]  ;;  %v1104_v3 = vpack.c.bf16 %v35_v1, %v34_v0 }
   0x3   :  { %1054 = vmatprep.mubr.msk.f32.mxu0 %vm43_vm0, %v30_v2 }
   0x4   :  { %13 = vsyncpa [#allocation3], 0  ;;  %1105 = vmatprep.subr.bf16.mxu0 %v1104_v3  ;;  %v31_v4 = vld [vmem:[%s1525_s0 + $0x8] sm:$0xff]  ;;  %v1330_v5 = vld [vmem:[%s1527_s2] ss:$0 sm:$0xff]  ;;  %s1262_s1 = smov 32  }
   0x5   :  { %1107 = vmatpush3.bf16.msra.mxu0 %v1104_v3  ;;  %v142_v19 = vld [vmem:[%s1528_s3 + $0x8] sm:$0xff]  ;;  %v144_v20 = vld [vmem:[%s1528_s3 + $0x18] sm:$0xff]  ;;  %v141_v21 = vld [vmem:[%s1528_s3] sm:$0xff]  ;;  %v1263_v26 = vmov 0.0   ;;  %vm187_vm1 = vcmask 261120   ;;  %v1265_v1 = vmov 0.0|0.0  }
   0x6   :  { %v1347_v22 = vpack.c.bf16 %v144_v20, %v142_v19  ;;  %v143_v23 = vld [vmem:[%s1528_s3 + $0x10] sm:$0xff]  ;;  %v146_v24 = vld [vmem:[%s1528_s3 + $0x28] sm:$0xff]  ;;  %v148_v25 = vld [vmem:[%s1528_s3 + $0x38] sm:$0xff]  ;;  %254 = vmatprep.mubr.f32.mxu1 %v1263_v26  ;;  %vm1266_vm2 = vmmov 0  }
   0x7   :  { %v1359_v27 = vpack.c.bf16 %v143_v23, %v141_v21  ;;  %v1361_v28 = vpack.c.bf16 %v148_v25, %v146_v24  ;;  %v145_v29 = vld [vmem:[%s1528_s3 + $0x20] sm:$0xff]  ;;  %v147_v30 = vld [vmem:[%s1528_s3 + $0x30] sm:$0xff]  ;;  %s1264_s3 = smov 64   ;;  %v150_v0 = vld [vmem:[%s1529_s4 + $0x8] sm:$0xff] }
   0x8   :  { %1055 = vmatmul.mubr.msk.f32.vlgmr.msra.gmra.mrb[0].mxu0 %vm43_vm0, %v31_v4  ;;  %1109 = vmatprep.subr.bf16.mxu1 %v1347_v22  ;;  %v1372_v31 = vpack.c.bf16 %v147_v30, %v145_v29  ;;  %v1387_v37 = vld [vmem:[%s1530_s5] ss:$0 sm:$0xff]  ;;  %v32_v62 = vld [vmem:[%s1525_s0 + $0x10] sm:$0xff]  ;;  %v33_v3 = vld [vmem:[%s1525_s0 + $0x18] sm:$0xff] }
   0x9   :  { %1117 = vmatprep.subr.bf16.mxu0 %v1347_v22  ;;  %1111 = vmatpush1.bf16.msra.mxu1 %v1359_v27  ;;  %v149_v63 = vld [vmem:[%s1529_s4] sm:$0xff]  ;;  %v151_v4 = vld [vmem:[%s1529_s4 + $0x10] sm:$0xff] }
   0xa   :  { %1119 = vmatpush1.bf16.msra.mxu0 %v1359_v27  ;;  %1113 = vmatprep.subr.bf16.mxu1 %v1361_v28  ;;  %v1412_v2 = vpack.c.bf16 %v150_v0, %v149_v63 }
   0xb   :  { %1121 = vmatprep.subr.bf16.mxu0 %v1361_v28  ;;  %1057 = vmatprep.mubr.msk.f32.mxu0 %vm43_vm0, %v32_v62 }
   0xc   :  { %1058 = vmatmul.mubr.msk.f32.gmra.mrb[2].mxu0 %vm43_vm0, %v33_v3 }
   0xd   :  { %1115 = vmatpush1.bf16.msra.mxu1 %v1372_v31  ;;  %380 = vmatprep.mubr.f32.mxu0 %v1263_v26 }
   0xe   :  { %1123 = vmatpush1.bf16.msra.mxu0 %v1372_v31  ;;  %1124 = vmatprep.subr.bf16.mxu1 %v1265_v1 }
   0xf   :  { %1131 = vmatprep.subr.bf16.mxu0 %v1347_v22 }
  0xdb   :  { %v1056_v6 = vpop.f32.mrb[0].mxu0 }
  0xdc   :  { %v122_v7 = vpop.f32.mrb[1].mxu0  ;;  %v128_v36 = vadd.f32 %v1056_v6, %v1330_v5  ;;  %v152_v6 = vld [vmem:[%s1529_s4 + $0x18] sm:$0xff] }
  0xdd   :  { %v123_v8 = vadd.f32 %v1330_v5, %v122_v7  ;;  %v1425_v7 = vpack.c.bf16 %v152_v6, %v151_v4 }
  0xdf   :  { %1170 = vtanh.f32 %v123_v8  ;;  %v1007_v10 = vmul.f32 -1.442695, %v123_v8 }
  0xe1   :  { %1172 = vpow2.f32 %v1007_v10 }
  0xe9   :  { %v1171_v9 = vpop.eup %1170 }
  0xea   :  { %169 = vrot.lane.b32.xlu0 %v1171_v9, %s1262_s1 }
  0xeb   :  { %v1173_v11 = vpop.eup %1172 }
  0xec   :  { %v163_v12 = vadd.f32 1.0, %v1173_v11 }
  0xee   :  { %1174 = vrcp.f32 %v163_v12 }
  0xf8   :  { %v1175_v13 = vpop.eup %1174 }
  0xf9   :  { %v167_v16 = vmul.f32 0.0, %v1175_v13 }
 0x15c   :  { %v170_v14 = vpop.permute.xlu0 %169 }
 0x15d   :  { %v172_v15 = vmul.f32 %v1175_v13, %v170_v14  ;;  %v1437_v14 = vpop.f32.mrb[2].mxu0 }
 0x15f   :  { %174 = vrot.lane.b32.xlu0 %v172_v15, %s1262_s1  ;;  %v132_v15 = vpop.f32.mrb[3].mxu0 }
 0x1d1   :  { %v175_v17 = vpop.permute.xlu0 %174 }
 0x1d2   :  { %v1335_v18 = vadd.f32 %v175_v17, %v167_v16 }
 0x1d4   :  { %1176 = vtanh.f32 %v1335_v18 }
 0x1de   :  { %v1177_v32 = vpop.eup %1176 }
 0x1df   :  { %180 = vrot.lane.b32.xlu1 %v1177_v32, %s1262_s1 }
 0x251   :  { %v181_v33 = vpop.permute.xlu1 %180 }
 0x252   :  { %v183_v34 = vmul.f32 %v1175_v13, %v181_v33 }
 0x254   :  { %185 = vrot.lane.b32.xlu1 %v183_v34, %s1264_s3 }
 0x2c6   :  { %v186_v35 = vpop.permute.xlu1 %185 }
 0x2c7   :  { %1008 = vmatmul.mubr.msk.f32.vlgmr.msra.gmra.mrb[0].mxu1 %vm187_vm1, %v186_v35 }
 0x2c8   :  { %1126 = vmatpush3.bf16.msra.mxu1 %v1412_v2  ;;  %1068 = vmatprep.mubr.msk.f32.mxu1 %vm1266_vm2, %v1263_v26 }
 0x2c9   :  { %1127 = vmatprep.subr.bf16.mxu1 %v1265_v1 }
 0x2cc   :  { %1129 = vmatpush3.bf16.msra.mxu1 %v1425_v7 }
 0x2cd   :  { %1138 = vmatprep.subr.bf16.mxu1 %v1265_v1 }
 0x39a   :  { %v256_v38 = vpop.f32.mrb[0].mxu1 }
 0x39b   :  { %v262_v39 = vadd.f32 %v256_v38, %v128_v36  ;;  %v258_v40 = vpop.f32.mrb[1].mxu1 }
 0x39c   :  { %v261_v41 = vadd.f32 %v1387_v37, %v258_v40 }
 0x39d   :  { %1178 = vtanh.f32 %v262_v39  ;;  %v1010_v44 = vmul.f32 -1.442695, %v262_v39 }
 0x39e   :  { %1180 = vtanh.f32 %v261_v41  ;;  %v1009_v45 = vmul.f32 -1.442695, %v261_v41 }
 0x39f   :  { %1182 = vpow2.f32 %v1010_v44 }
 0x3a0   :  { %1184 = vpow2.f32 %v1009_v45 }
 0x3a7   :  { %v1179_v42 = vpop.eup %1178 }
 0x3a8   :  { %v1181_v43 = vpop.eup %1180  ;;  %296 = vrot.lane.b32.xlu0 %v1179_v42, %s1262_s1 }
 0x3a9   :  { %272 = vrot.lane.b32.xlu1 %v1181_v43, %s1262_s1  ;;  %v1183_v46 = vpop.eup %1182 }
 0x3aa   :  { %v1185_v47 = vpop.eup %1184  ;;  %v290_v48 = vadd.f32 1.0, %v1183_v46 }
 0x3ab   :  { %v266_v49 = vadd.f32 1.0, %v1185_v47 }
 0x3ac   :  { %1186 = vrcp.f32 %v290_v48 }
 0x3ad   :  { %1188 = vrcp.f32 %v266_v49 }
 0x3b6   :  { %v1187_v50 = vpop.eup %1186 }
 0x3b7   :  { %v1189_v52 = vpop.eup %1188  ;;  %v294_v56 = vmul.f32 %v1187_v50, %v1335_v18  ;;  %v133_v18 = vadd.f32 %v1330_v5, %v132_v15 }
 0x3b8   :  { %v270_v58 = vmul.f32 0.0, %v1189_v52 }
 0x41a   :  { %v297_v51 = vpop.permute.xlu0 %296 }
 0x41b   :  { %v299_v53 = vmul.f32 %v1187_v50, %v297_v51  ;;  %v273_v54 = vpop.permute.xlu1 %272 }
 0x41c   :  { %v275_v55 = vmul.f32 %v1189_v52, %v273_v54 }
 0x41d   :  { %301 = vrot.lane.b32.xlu0 %v299_v53, %s1262_s1 }
 0x41e   :  { %277 = vrot.lane.b32.xlu1 %v275_v55, %s1262_s1 }
 0x48f   :  { %v302_v57 = vpop.permute.xlu0 %301 }
 0x490   :  { %v1395_v59 = vadd.f32 %v302_v57, %v294_v56  ;;  %v278_v60 = vpop.permute.xlu1 %277 }
 0x491   :  { %v1397_v61 = vadd.f32 %v278_v60, %v270_v58 }
 0x492   :  { %1190 = vtanh.f32 %v1395_v59 }
 0x493   :  { %1192 = vtanh.f32 %v1397_v61 }
 0x49c   :  { %v1191_v8 = vpop.eup %1190 }
 0x49d   :  { %v1193_v9 = vpop.eup %1192  ;;  %307 = vrot.lane.b32.xlu0 %v1191_v8, %s1262_s1 }
 0x49e   :  { %283 = vrot.lane.b32.xlu1 %v1193_v9, %s1262_s1 }
 0x50f   :  { %v308_v10 = vpop.permute.xlu0 %307 }
 0x510   :  { %v310_v11 = vmul.f32 %v1187_v50, %v308_v10  ;;  %v284_v12 = vpop.permute.xlu1 %283 }
 0x511   :  { %v286_v13 = vmul.f32 %v1189_v52, %v284_v12 }
 0x512   :  { %312 = vrot.lane.b32.xlu0 %v310_v11, %s1264_s3 }
 0x513   :  { %389 = vrot.lane.b32.xlu1 %v286_v13, %s1264_s3 }
 0x584   :  { %v313_v16 = vpop.permute.xlu0 %312 }
 0x585   :  { %1011 = vmatmul.mubr.msk.f32.vlgmr.msra.gmra.mrb[4].mxu0 %vm187_vm1, %v313_v16  ;;  %v390_v17 = vpop.permute.xlu1 %389 }
 0x586   :  { %1069 = vmatmul.mubr.msk.f32.vlgmr.msra.gmra.mrb[2].mxu1 %vm187_vm1, %v390_v17  ;;  %1133 = vmatpush1.bf16.msra.mxu0 %v1359_v27 }
 0x587   :  { %1135 = vmatprep.subr.bf16.mxu0 %v1361_v28  ;;  %1140 = vmatpush3.bf16.msra.mxu1 %v1412_v2 }
 0x588   :  { %582 = vmatprep.mubr.f32.mxu0 %v1263_v26  ;;  %1141 = vmatprep.subr.bf16.mxu1 %v1265_v1 }
 0x589   :  { %1079 = vmatprep.mubr.msk.f32.mxu1 %vm1266_vm2, %v1263_v26 }
 0x58a   :  { %1137 = vmatpush1.bf16.msra.mxu0 %v1372_v31 }
 0x58b   :  { %1143 = vmatpush3.bf16.msra.mxu1 %v1425_v7  ;;  %1145 = vmatprep.subr.bf16.mxu0 %v1347_v22 }
 0x58c   :  { %1152 = vmatprep.subr.bf16.mxu1 %v1265_v1 }
 0x658   :  { %v382_v19 = vpop.f32.mrb[4].mxu0 }
 0x659   :  { %v464_v20 = vadd.f32 %v382_v19, %v133_v18  ;;  %v384_v21 = vpop.f32.mrb[5].mxu0  ;;  %v459_v23 = vpop.f32.mrb[2].mxu1 }
 0x65a   :  { %v387_v24 = vadd.f32 %v1387_v37, %v384_v21  ;;  %v1070_v25 = vpop.f32.mrb[3].mxu1 }
 0x65b   :  { %1194 = vtanh.f32 %v464_v20  ;;  %v1014_v22 = vmul.f32 -1.442695, %v464_v20 }
 0x65c   :  { %v463_v29 = vadd.f32 %v459_v23, %v387_v24 }
 0x65e   :  { %1196 = vtanh.f32 %v463_v29  ;;  %v1013_v33 = vmul.f32 -1.442695, %v463_v29 }
 0x65f   :  { %1198 = vpow2.f32 %v1014_v22 }
 0x660   :  { %1200 = vpow2.f32 %v1013_v33 }
 0x665   :  { %v1195_v30 = vpop.eup %1194 }
 0x666   :  { %498 = vrot.lane.b32.xlu0 %v1195_v30, %s1262_s1 }
 0x668   :  { %v1197_v32 = vpop.eup %1196 }
 0x669   :  { %474 = vrot.lane.b32.xlu1 %v1197_v32, %s1262_s1  ;;  %v1199_v34 = vpop.eup %1198 }
 0x66a   :  { %v1201_v35 = vpop.eup %1200  ;;  %v492_v36 = vadd.f32 1.0, %v1199_v34 }
 0x66b   :  { %v468_v38 = vadd.f32 1.0, %v1201_v35 }
 0x66c   :  { %1202 = vrcp.f32 %v492_v36 }
 0x66d   :  { %1204 = vrcp.f32 %v468_v38 }
 0x676   :  { %v1203_v39 = vpop.eup %1202 }
 0x677   :  { %v1205_v42 = vpop.eup %1204  ;;  %v496_v45 = vmul.f32 %v1203_v39, %v1395_v59 }
 0x678   :  { %v472_v48 = vmul.f32 %v1205_v42, %v1397_v61 }
 0x6d8   :  { %v499_v40 = vpop.permute.xlu0 %498 }
 0x6d9   :  { %v501_v41 = vmul.f32 %v1203_v39, %v499_v40 }
 0x6db   :  { %503 = vrot.lane.b32.xlu0 %v501_v41, %s1262_s1  ;;  %v475_v43 = vpop.permute.xlu1 %474 }
 0x6dc   :  { %v477_v44 = vmul.f32 %v1205_v42, %v475_v43 }
 0x6de   :  { %479 = vrot.lane.b32.xlu1 %v477_v44, %s1262_s1 }
 0x74d   :  { %v504_v46 = vpop.permute.xlu0 %503 }
 0x74e   :  { %v506_v47 = vadd.f32 %v504_v46, %v496_v45 }
 0x750   :  { %1206 = vtanh.f32 %v506_v47  ;;  %v480_v49 = vpop.permute.xlu1 %479 }
 0x751   :  { %v482_v50 = vadd.f32 %v480_v49, %v472_v48  ;;  %v891_v48 = vld [vmem:[%s1531_s6] sm:$0xff]  ;;  %v892_v49 = vld [vmem:[%s1531_s6 + $0x8] sm:$0xff] }
 0x753   :  { %1208 = vtanh.f32 %v482_v50 }
 0x75a   :  { %v1207_v51 = vpop.eup %1206 }
 0x75b   :  { %509 = vrot.lane.b32.xlu0 %v1207_v51, %s1262_s1  ;;  %v1159_v51 = vpack.c.bf16 %v892_v49, %v891_v48 }
 0x75d   :  { %v1209_v52 = vpop.eup %1208 }
 0x75e   :  { %485 = vrot.lane.b32.xlu1 %v1209_v52, %s1262_s1  ;;  %v894_v52 = vld [vmem:[%s1531_s6 + $0x18] sm:$0xff] }
 0x7cd   :  { %v510_v53 = vpop.permute.xlu0 %509 }
 0x7ce   :  { %v512_v54 = vmul.f32 %v1203_v39, %v510_v53 }
 0x7d0   :  { %514 = vrot.lane.b32.xlu0 %v512_v54, %s1264_s3  ;;  %v486_v55 = vpop.permute.xlu1 %485 }
 0x7d1   :  { %v488_v56 = vmul.f32 %v1205_v42, %v486_v55 }
 0x7d3   :  { %591 = vrot.lane.b32.xlu1 %v488_v56, %s1264_s3 }
 0x842   :  { %v515_v57 = vpop.permute.xlu0 %514 }
 0x843   :  { %1015 = vmatmul.mubr.msk.f32.vlgmr.msra.gmra.mrb[6].mxu0 %vm187_vm1, %v515_v57 }
 0x844   :  { %1147 = vmatpush1.bf16.msra.mxu0 %v1359_v27  ;;  %784 = vmatprep.mubr.f32.mxu0 %v1263_v26  ;;  %v138_v27 = vadd.f32 %v1437_v14, %v1330_v5 }
 0x845   :  { %v592_v58 = vpop.permute.xlu1 %591  ;;  %1149 = vmatprep.subr.bf16.mxu0 %v1361_v28 }
 0x846   :  { %1080 = vmatmul.mubr.msk.f32.vlgmr.msra.gmra.mrb[4].mxu1 %vm187_vm1, %v592_v58  ;;  %v1022_v58 = vld [vmem:[%s1532_s7] ss:$0 sm:$0xff] }
 0x847   :  { %1154 = vmatpush3.bf16.msra.mxu1 %v1412_v2  ;;  %1090 = vmatprep.mubr.msk.f32.mxu1 %vm1266_vm2, %v1263_v26 }
 0x848   :  { %1151 = vmatpush1.bf16.msra.mxu0 %v1372_v31  ;;  %1155 = vmatprep.subr.bf16.mxu1 %v1265_v1 }
 0x849   :  { %1158 = vmatprep.subr.bf16.mxu0 %v1265_v1 }
 0x84b   :  { %1157 = vmatpush3.bf16.msra.mxu1 %v1425_v7 }
 0x916   :  { %v584_v59 = vpop.f32.mrb[6].mxu0 }
 0x917   :  { %v666_v28 = vadd.f32 %v584_v59, %v138_v27  ;;  %v586_v60 = vpop.f32.mrb[7].mxu0 }
 0x918   :  { %v589_v61 = vadd.f32 %v1387_v37, %v586_v60 }
 0x919   :  { %1210 = vtanh.f32 %v666_v28  ;;  %v661_v62 = vpop.f32.mrb[4].mxu1  ;;  %v1018_v3 = vmul.f32 -1.442695, %v666_v28 }
 0x91a   :  { %v665_v63 = vadd.f32 %v661_v62, %v589_v61  ;;  %v1081_v0 = vpop.f32.mrb[5].mxu1 }
 0x91c   :  { %1212 = vtanh.f32 %v665_v63  ;;  %v1017_v4 = vmul.f32 -1.442695, %v665_v63 }
 0x91d   :  { %1214 = vpow2.f32 %v1018_v3 }
 0x91e   :  { %1216 = vpow2.f32 %v1017_v4 }
 0x923   :  { %v1211_v31 = vpop.eup %1210 }
 0x924   :  { %700 = vrot.lane.b32.xlu0 %v1211_v31, %s1262_s1 }
 0x926   :  { %v1213_v2 = vpop.eup %1212 }
 0x927   :  { %676 = vrot.lane.b32.xlu1 %v1213_v2, %s1262_s1  ;;  %v1215_v5 = vpop.eup %1214 }
 0x928   :  { %v1217_v6 = vpop.eup %1216  ;;  %v694_v7 = vadd.f32 1.0, %v1215_v5 }
 0x929   :  { %v670_v8 = vadd.f32 1.0, %v1217_v6 }
 0x92a   :  { %1218 = vrcp.f32 %v694_v7 }
 0x92b   :  { %1220 = vrcp.f32 %v670_v8 }
 0x934   :  { %v1219_v9 = vpop.eup %1218 }
 0x935   :  { %v1221_v12 = vpop.eup %1220  ;;  %v698_v15 = vmul.f32 %v1219_v9, %v506_v47 }
 0x936   :  { %v674_v18 = vmul.f32 %v1221_v12, %v482_v50  ;;  %v893_v50 = vld [vmem:[%s1531_s6 + $0x10] sm:$0xff]  ;;  %s1267_s6 = smov [#allocation2]  }
 0x937   :  { %v1162_v53 = vpack.c.bf16 %v894_v52, %v893_v50 }
 0x996   :  { %v701_v10 = vpop.permute.xlu0 %700 }
 0x997   :  { %v703_v11 = vmul.f32 %v1219_v9, %v701_v10 }
 0x999   :  { %705 = vrot.lane.b32.xlu0 %v703_v11, %s1262_s1  ;;  %v677_v13 = vpop.permute.xlu1 %676 }
 0x99a   :  { %v679_v14 = vmul.f32 %v1221_v12, %v677_v13 }
 0x99c   :  { %681 = vrot.lane.b32.xlu1 %v679_v14, %s1262_s1 }
 0xa0b   :  { %v706_v16 = vpop.permute.xlu0 %705 }
 0xa0c   :  { %v708_v17 = vadd.f32 %v706_v16, %v698_v15 }
 0xa0e   :  { %1222 = vtanh.f32 %v708_v17  ;;  %v682_v19 = vpop.permute.xlu1 %681 }
 0xa0f   :  { %v684_v20 = vadd.f32 %v682_v19, %v674_v18 }
 0xa11   :  { %1224 = vtanh.f32 %v684_v20 }
 0xa18   :  { %v1223_v21 = vpop.eup %1222 }
 0xa19   :  { %711 = vrot.lane.b32.xlu0 %v1223_v21, %s1262_s1 }
 0xa1b   :  { %v1225_v23 = vpop.eup %1224 }
 0xa1c   :  { %687 = vrot.lane.b32.xlu1 %v1225_v23, %s1262_s1 }
 0xa8b   :  { %v712_v24 = vpop.permute.xlu0 %711 }
 0xa8c   :  { %v714_v25 = vmul.f32 %v1219_v9, %v712_v24 }
 0xa8e   :  { %716 = vrot.lane.b32.xlu0 %v714_v25, %s1264_s3  ;;  %v688_v29 = vpop.permute.xlu1 %687 }
 0xa8f   :  { %v690_v30 = vmul.f32 %v1221_v12, %v688_v29 }
 0xa91   :  { %792 = vrot.lane.b32.xlu1 %v690_v30, %s1264_s3 }
 0xb00   :  { %v717_v32 = vpop.permute.xlu0 %716 }
 0xb01   :  { %1019 = vmatmul.mubr.msk.f32.vlgmr.msra.gmra.mrb[8].mxu0 %vm187_vm1, %v717_v32 }
 0xb02   :  { %1101 = vmatprep.mubr.msk.f32.mxu0 %vm1266_vm2, %v1263_v26  ;;  %1160 = vmatpush3.bf16.msra.mxu0 %v1159_v51 }
 0xb03   :  { %v793_v22 = vpop.permute.xlu1 %792  ;;  %1161 = vmatprep.subr.bf16.mxu0 %v1265_v1 }
 0xb04   :  { %1091 = vmatmul.mubr.msk.f32.vlgmr.msra.gmra.mrb[6].mxu1 %vm187_vm1, %v793_v22 }
 0xb06   :  { %1163 = vmatpush3.bf16.msra.mxu0 %v1162_v53 }
 0xbd4   :  { %v786_v33 = vpop.f32.mrb[8].mxu0 }
 0xbd5   :  { %v787_v34 = vpop.f32.mrb[9].mxu0 }
 0xbd6   :  { %v790_v35 = vadd.f32 %v1387_v37, %v787_v34 }
 0xbd7   :  { %v862_v36 = vpop.f32.mrb[6].mxu1 }
 0xbd8   :  { %v866_v38 = vadd.f32 %v862_v36, %v790_v35  ;;  %v1092_v39 = vpop.f32.mrb[7].mxu1 }
 0xbda   :  { %1226 = vtanh.f32 %v866_v38  ;;  %v1021_v41 = vmul.f32 -1.442695, %v866_v38 }
 0xbdc   :  { %1228 = vpow2.f32 %v1021_v41 }
 0xbe4   :  { %v1227_v40 = vpop.eup %1226 }
 0xbe5   :  { %876 = vrot.lane.b32.xlu0 %v1227_v40, %s1262_s1 }
 0xbe6   :  { %v1229_v42 = vpop.eup %1228 }
 0xbe7   :  { %v870_v43 = vadd.f32 1.0, %v1229_v42 }
 0xbe9   :  { %1230 = vrcp.f32 %v870_v43 }
 0xbf3   :  { %v1231_v26 = vpop.eup %1230 }
 0xbf4   :  { %v874_v46 = vmul.f32 %v1231_v26, %v684_v20 }
 0xc57   :  { %v877_v44 = vpop.permute.xlu0 %876 }
 0xc58   :  { %v879_v45 = vmul.f32 %v1231_v26, %v877_v44 }
 0xc5a   :  { %881 = vrot.lane.b32.xlu1 %v879_v45, %s1262_s1 }
 0xccc   :  { %v882_v47 = vpop.permute.xlu1 %881 }
 0xccd   :  { %v884_v37 = vadd.f32 %v882_v47, %v874_v46 }
 0xccf   :  { %1232 = vtanh.f32 %v884_v37 }
 0xcd9   :  { %v1233_v54 = vpop.eup %1232 }
 0xcda   :  { %887 = vrot.lane.b32.xlu0 %v1233_v54, %s1262_s1  ;;  %s993_s1 = sshll.u32 %s1267_s6, 4  ;;  %s994_s1 = int_to_ptr.vmem [resolvable:$true] %s993_s1 }
 0xcdb   :  { %s1238_s28 = scalar_lea.vmem %s994_s1, 128  ;;  %p1243_p1 = scmp.lt.s32.totalorder %s994_s1, %s994_s1 }
 0xcdc   :  { %p1239_p0 = scmp.ne.s32.totalorder %s994_s1, %s1238_s28  ;;  %p1244_p2 = scmp.lt.s32.totalorder %s1238_s28, %s1238_s28 }
 0xcde   :  { %p1245_p3 = por %p1244_p2, %p1243_p1 }
 0xce0   :  { %p1246_p4 = pnand %p1245_p3, %p1239_p0 }
 0xd4c   :  { %v888_v55 = vpop.permute.xlu0 %887 }
 0xd4d   :  { %v890_v56 = vmul.f32 %v1231_v26, %v888_v55 }
 0xd4f   :  { %903 = vrot.lane.b32.xlu1 %v890_v56, %s1264_s3 }
 0xdc1   :  { %v904_v57 = vpop.permute.xlu1 %903 }
 0xdc2   :  { %1102 = vmatmul.mubr.msk.f32.vlgmr.msra.gmra.mrb[10].mxu0 %vm187_vm1, %v904_v57 }
 0xe95   :  { %v973_v27 = vpop.f32.mrb[10].mxu0 }
 0xe96   :  { %v974_v59 = vadd.f32 %v1022_v58, %v973_v27  ;;  %v1103_v28 = vpop.f32.mrb[11].mxu0 }
 0xe98   :  { %977 = vmax.xlane.f32.xlu0 %v974_v59 }
 0xf25   :  { %v978_v1 = vpop.xlane.xlu0 %977 }
 0xf26   :  { %v979_v60 = vsub.f32 %v974_v59, %v978_v1 }
 0xf28   :  { %v980_v61 = vmul.f32 1.442695, %v979_v60 }
 0xf2a   :  { %1234 = vpow2.f32 %v980_v61 }
 0xf34   :  { %v1235_v62 = vpop.eup %1234 }
 0xf35   :  { %982 = vadd.xlane.f32.xlu1 %v1235_v62 }
 0xfc2   :  { %v983_v63 = vpop.xlane.xlu1 %982 }
 0xfc3   :  { %1236 = vrcp.f32 %v983_v63 }
 0xfcd   :  { %v1237_v0 = vpop.eup %1236 }
 0xfce   :  { %v985_v31 = vmul.f32 %v1237_v0, %v1235_v62 }
 0xfd0   :  { %986 = vst [vmem:[#allocation2] sm:$0xff] %v985_v31 }
 0xfd1   :  { %1249 = shalt.err (!%p1246_p4)
}
 0xfd2   :  { %s1250_s3 = scalar_lea.hbm %s1533_s8, 128 }
 0xfd3   :  { %p1251_p5 = scmp.ne.s32.totalorder %s1533_s8, %s1250_s3  ;;  %p1254_p6 = scmp.lt.u32.totalorder %s1250_s3, %s1533_s8 }
 0xfd5   :  { %p1256_p7 = pnand %p1254_p6, %p1251_p5 }
 0xfd7   :  { %1259 = shalt.err (!%p1256_p7)
}
 0xfd8   :  { %996 = dma.vmem_to_hbm [thread:$0]  %s994_s1, 128, %s1533_s8, [#allocation3]  }
 0xfd9   :  { %1260 = dma.done.wait [#allocation3], 128  }
 0xfda   :  { %1261 = vsyncadd [#allocation3], 4294967168 }
 0xfdb   :  { %1000 = vsyncpa [#allocation3], 1 }

</bundles_post_ra>
